<compile_context>
chip_gen: v7x
topology: tpu7x:2x2x1
jax: 0.10.0
libtpu: 0.0.40
codegen_flags: <defaults>
</compile_context>

<pallas_src>
import functools
import math

import jax
import jax.numpy as jnp
import numpy as np
from jax.experimental import pallas as pl
from jax.experimental.pallas import tpu as pltpu


def _round_up(x, m):
    return ((x + m - 1) // m) * m


def _reorg_kernel(v_ref, p_ref, o_ref, *, precision):
    # v_ref: (TM, LW) tile of flattened row-groups (lane-dense, contiguous).
    # p_ref: (LW, LW) constant block-diagonal 0/1 permutation matrix.
    # o_ref: (TM, LW) permuted tile.
    # Exactly one nonzero per P row => the matmul is a pure lane shuffle that
    # runs on the MXU instead of the VPU/XLU.
    o_ref[...] = jnp.dot(
        v_ref[...],
        p_ref[...],
        preferred_element_type=jnp.float32,
        precision=precision,
    ).astype(o_ref.dtype)


def _permutation_matrix(stride, w, group, dtype):
    """Block-diagonal (group*s*W, group*s*W) 0/1 matrix for the reorg shuffle.

    Within one s*W segment (one (b, c, hh) row-group), input column
      i = sh*W + ww*s + sw      (layout of x.reshape(..., s*W))
    goes to output column
      j = ww*s*s + sh*s + sw    (layout of the PyTorch permuted/contiguous view).
    """
    s = stride
    _w = w // s
    seg = s * w
    sh = np.arange(s).reshape(s, 1, 1)
    ww = np.arange(_w).reshape(1, _w, 1)
    sw = np.arange(s).reshape(1, 1, s)
    i_seg = (sh * w + ww * s + sw).reshape(-1)
    j_seg = (ww * s * s + sh * s + sw).reshape(-1)
    lw = group * seg
    p = np.zeros((lw, lw), dtype=np.float32)
    for g in range(group):
        p[g * seg + i_seg, g * seg + j_seg] = 1.0
    return jnp.asarray(p, dtype=dtype)


def _pick_group(sW, m, max_lw=1024):
    """Fuse G row-groups so LW = G*sW is a multiple of 128 (lane-dense,
    unmasked stores) while G divides the row-group count (no padding)."""
    if sW % 128 == 0:
        return 1
    g_lane = (sW * 128 // math.gcd(sW, 128)) // sW  # smallest G with 128 | G*sW
    g = g_lane
    while g * sW <= max_lw:
        if m % g == 0:
            return g
        g += g_lane
    # Fallback: ragged lane width. Block last dim then equals the full array
    # dim, which is still a legal (if masked-store) layout, and avoids padding.
    return 1


def _pick_tile_rows(m2, lw, in_bytes, out_bytes, sub,
                    tile_budget=24 * 1024 * 1024):
    """Rows per grid step: a multiple of the sublane tile that divides m2 when
    possible (no padding), fits a VMEM budget, and is small enough that the
    grid has >= 2 parallel steps (v7x megacore) whenever m2 allows."""
    if m2 <= sub:
        return m2, False                        # single full-height tile
    per_row = 2 * lw * (in_bytes + out_bytes)   # double-buffered in + out tiles
    cap = max(sub, (tile_budget // per_row) // sub * sub)
    cap = min(cap, 2048)
    if m2 >= 2 * sub:
        cap = min(cap, max(sub, (m2 // 2) // sub * sub))   # >= 2 grid steps
    best = 0
    d = sub
    top = min(cap, m2)
    while d <= top:
        if m2 % d == 0:
            best = d
        d += sub
    if best:
        return best, False
    if m2 <= cap:
        return m2, False                        # full-height tile, no padding
    return cap, True                            # cold path: pad rows


@functools.partial(jax.jit, static_argnames=("stride",))
def reorg_forward(x, stride=2):
    """Pallas TPU implementation of reorg.forward for an NCHW input."""
    B, C, H, W = x.shape
    s = stride
    assert H % s == 0 and W % s == 0, "Input dimensions must be divisible by stride."
    _h, _w = H // s, W // s

    if x.dtype == jnp.float32:
        p_dtype = jnp.float32
        precision = jax.lax.Precision.HIGHEST   # bit-exact f32 shuffle on the MXU
        sub = 8                                 # f32 sublane tile
    elif x.dtype == jnp.bfloat16:
        p_dtype = jnp.bfloat16
        precision = jax.lax.Precision.DEFAULT   # bf16 * {0,1} with f32 acc is exact
        sub = 16                                # bf16 sublane tile
    else:
        # TODO(synk): integer dtypes need a non-MXU shuffle path (v7x MXU has no int mode).
        raise NotImplementedError(f"reorg Pallas kernel supports f32/bf16, got {x.dtype}")

    itemsize = jnp.dtype(x.dtype).itemsize
    sW = s * W                    # one (b, c, hh) row-group, flattened
    M = B * C * _h                # number of row-groups
    G = _pick_group(sW, M)        # fused row-groups per matrix row
    LW = G * sW                   # lane width of the kernel matrix

    M2 = -(-M // G)               # rows of the lane-dense matrix
    TM, pad_rows_needed = _pick_tile_rows(M2, LW, itemsize, itemsize, sub)
    M2p = _round_up(M2, TM) if pad_rows_needed else M2

    # Wrapper-side work on the hot path: contiguous (free) reshapes only.
    v = x.reshape(M, sW)
    total_pad = M2p * G - M
    if total_pad:
        # Cold path only (M has no convenient factorization): costs one extra
        # HBM round-trip of the padded rows.
        v = jnp.pad(v, ((0, total_pad), (0, 0)))
    v2 = v.reshape(M2p, LW)

    perm = _permutation_matrix(s, W, G, p_dtype)    # (LW, LW) constant

    grid = (M2p // TM,)

    # Real VMEM footprint: double-buffered in/out tiles + double-buffered P
    # (constant index_map => P is DMA'd once; the second buffer only costs
    # VMEM, which is accounted for here). Kept <= 48 MiB for v7x.
    vmem_need = (2 * TM * LW * itemsize) * 2 + 2 * LW * LW * jnp.dtype(p_dtype).itemsize
    vmem_limit = min(48 * 1024 * 1024, max(32 * 1024 * 1024, vmem_need * 5 // 4))

    out2 = pl.pallas_call(
        functools.partial(_reorg_kernel, precision=precision),
        out_shape=jax.ShapeDtypeStruct((M2p, LW), x.dtype),
        grid=grid,
        in_specs=[
            pl.BlockSpec((TM, LW), lambda i: (i, 0)),
            pl.BlockSpec((LW, LW), lambda i: (0, 0)),
        ],
        out_specs=pl.BlockSpec((TM, LW), lambda i: (i, 0)),
        compiler_params=pltpu.CompilerParams(
            dimension_semantics=("parallel",),
            vmem_limit_bytes=vmem_limit,
        ),
    )(v2, perm)

    # Contiguous reshapes back to the PyTorch output layout (no transposes).
    out_flat = out2.reshape(M2p * G, sW)
    if total_pad:
        out_flat = out_flat[:M]
    return out_flat.reshape(B, C * s * s, _h, _w)


def _reference(x, stride):
    """Pure-JAX mirror of the PyTorch reorg.forward, for a sanity check."""
    B, C, H, W = x.shape
    s = stride
    _h, _w = H // s, W // s
    y = x.reshape(B, C, _h, s, _w, s)
    y = jnp.transpose(y, (0, 1, 2, 4, 3, 5))
    return y.reshape(B, C * s * s, _h, _w)


if __name__ == "__main__":
    B, C, H, W, S = 2, 4, 16, 16, 2

    key = jax.random.PRNGKey(0)
    x = jax.random.normal(key, (B, C, H, W), dtype=jnp.float32)

    out = jax.block_until_ready(reorg_forward(x, stride=S))
    ref = jax.block_until_ready(_reference(x, S))

    assert out.shape == (B, C * S * S, H // S, W // S), out.shape
    # With precision=HIGHEST the permutation-matmul is exact for f32 inputs, so
    # a tight tolerance is a genuine check on the permutation itself.
    assert jnp.allclose(out, ref, atol=1e-5, rtol=1e-5), "mismatch vs reference"

    print("KERNEL_OK")
</pallas_src>

<mosaic_0001>
module attributes {stable_mosaic.version = 11 : i64} {
  func.func @_reorg_kernel(%arg0: i32, %arg1: memref<8x128xf32, #tpu.memory_space<vmem>>, %arg2: memref<128x128xf32, #tpu.memory_space<vmem>>, %arg3: memref<8x128xf32, #tpu.memory_space<vmem>>) attributes {dimension_semantics = [#tpu.dimension_semantics<parallel>], iteration_bounds = array<i64: 2>, scalar_prefetch = 0 : i64, scratch_operands = 0 : i64, tpu.core_type = #tpu.core_type<tc>, window_params = [{transform_indices = @transform_0, window_bounds = array<i64: 8, 128>}, {pipeline_mode = #tpu.pipeline_mode<synchronous>, transform_indices = @transform_1, window_bounds = array<i64: 128, 128>}, {transform_indices = @transform_2, window_bounds = array<i64: 8, 128>}]} {
    %c0 = arith.constant 0 : index
    %c0_0 = arith.constant 0 : index
    %0 = vector.load %arg1[%c0, %c0_0] : memref<8x128xf32, #tpu.memory_space<vmem>>, vector<8x128xf32>
    %c0_1 = arith.constant 0 : index
    %c0_2 = arith.constant 0 : index
    %1 = vector.load %arg2[%c0_1, %c0_2] : memref<128x128xf32, #tpu.memory_space<vmem>>, vector<128x128xf32>
    %cst = arith.constant dense<0.000000e+00> : vector<8x128xf32>
    %2 = tpu.matmul %0, %1, %cst {dimension_numbers = #tpu.dot_dimension_numbers<[1], [0], [0], [1], [0, 0, 1, 1], [], []>, precision = #tpu.contract_precision<fp32>} : vector<8x128xf32>, vector<128x128xf32>, vector<8x128xf32> -> vector<8x128xf32>
    %c0_3 = arith.constant 0 : index
    %c0_4 = arith.constant 0 : index
    %3 = vector.load %arg3[%c0_3, %c0_4] : memref<8x128xf32, #tpu.memory_space<vmem>>, vector<8x128xf32>
    tpu.vector_store %arg3[%c0_3, %c0_4], %2 {strides = array<i32>} : memref<8x128xf32, #tpu.memory_space<vmem>>, vector<8x128xf32>,
    return
  }
  func.func @transform_0(%arg0: i32) -> (i32, i32) {
    %c0_i32 = arith.constant 0 : i32
    %c0_i32_0 = arith.constant 0 : i32
    return %arg0, %c0_i32 : i32, i32
  }
  func.func @transform_1(%arg0: i32) -> (i32, i32) {
    %c0_i32 = arith.constant 0 : i32
    %c0_i32_0 = arith.constant 0 : i32
    %c0_i32_1 = arith.constant 0 : i32
    return %c0_i32, %c0_i32_0 : i32, i32
  }
  func.func @transform_2(%arg0: i32) -> (i32, i32) {
    %c0_i32 = arith.constant 0 : i32
    %c0_i32_0 = arith.constant 0 : i32
    return %arg0, %c0_i32 : i32, i32
  }
}

</mosaic_0001>

<bundles_post_ra>
// kernel: reorg_forward.1
= control target key start
LH: loop header
LB: loop body
LE: loop exit
PB: predicated region body
PF: predicated region fallthrough
CT: control target
= control target key end

     0   :  { %s1362_s9 = smov 0   ;;  %s1697_s0 = inlined_call_operand.vmem [shape: f32[16,128], index: 0, kind: input, shape index: {}]   ;;  %s1698_s1 = inlined_call_operand.vmem [shape: f32[128,128], index: 1, kind: input, shape index: {}]   ;;  %s1699_s2 = inlined_call_operand.vmem [shape: f32[16,128], index: 2, kind: output, shape index: {}]  }
   0x1 LB: > { %s851_s10 = sadd.s32 4294967295, %s1342_s9   ;;  %p855_p0 = scmp.ge.s32.totalorder %s1342_s9, 1  ;;  %s1342_s9 = sphi %s1362_s9, %s12_s9  }
   0x2   : > { %p111_p1 = scmp.lt.s32.totalorder %s1342_s9, 3 }
   0x4   : > { %p112_p2 = pnand %p855_p0, %p111_p1 }
   0x5   : > { %v140_v0 = vld [vmem:[%s1698_s1] sm:$0xff] (!%p112_p2)  ;;  %v141_v1 = vld [vmem:[%s1698_s1 + $0x8] sm:$0xff] (!%p112_p2)  ;;  %v142_v2 = vld [vmem:[%s1698_s1 + $0x10] sm:$0xff] (!%p112_p2)  ;;  %v1344_v3 = vmov (!%p112_p2), 0.0|0.0   ;;  %vm1345_vm0 = vmmov (!%p112_p2), 0   ;;  %v1346_v11 = vmov (!%p112_p2), 0.0  }
   0x6   : > { %115 = sbr.rel (%p112_p2) target bundleno = 320 (0x140), region = 28  ;;  %1172 = vmatprep.subr.bf16.mxu1 (!%p112_p2), %v1344_v3  ;;  %1244 = vmatprep.subr.bf16.mxu0 (!%p112_p2), %v1344_v3  ;;  %v157_v4 = vand.u32 (!%p112_p2), 4294901760, %v140_v0  ;;  %v160_v5 = vand.u32 (!%p112_p2), 4294901760, %v141_v1  ;;  %v143_v6 = vld [vmem:[%s1698_s1 + $0x18] sm:$0xff] (!%p112_p2)  ;;  %v163_v7 = vand.u32 (!%p112_p2), 4294901760, %v142_v2  ;;  %v1387_v9 = vld [vmem:[%s1698_s1 + $0x20] sm:$0xff] (!%p112_p2) }
   0x7   : > { %v166_v8 = vand.u32 (!%p112_p2), 4294901760, %v143_v6  ;;  %v1392_v10 = vld [vmem:[%s1698_s1 + $0x28] sm:$0xff] (!%p112_p2)  ;;  %994 = vmatprep.mubr.msk.f32.mxu1 (!%p112_p2), %vm1345_vm0, %v1346_v11  ;;  %1099 = vmatprep.mubr.msk.f32.mxu0 (!%p112_p2), %vm1345_vm0, %v1346_v11  ;;  %p131_p3 = scmp.lt.s32.totalorder (!%p112_p2), %s851_s10, 1  ;;  %v169_v14 = vand.u32 (!%p112_p2), 4294901760, %v1387_v9  ;;  %v1413_v16 = vld [vmem:[%s1698_s1 + $0x30] sm:$0xff] (!%p112_p2)  ;;  %v1418_v17 = vld [vmem:[%s1698_s1 + $0x38] sm:$0xff] (!%p112_p2) }
   0x8   : > { %v1398_v12 = vpack.c.bf16 (!%p112_p2), %v160_v5, %v157_v4  ;;  %v172_v15 = vand.u32 (!%p112_p2), 4294901760, %v1392_v10  ;;  %v175_v19 = vand.u32 (!%p112_p2), 4294901760, %v1413_v16  ;;  %v178_v20 = vand.u32 (!%p112_p2), 4294901760, %v1418_v17  ;;  %v1432_v21 = vld [vmem:[%s1698_s1 + $0x40] sm:$0xff] (!%p112_p2)  ;;  %v1437_v22 = vld [vmem:[%s1698_s1 + $0x48] sm:$0xff] (!%p112_p2)  ;;  %v1455_v27 = vld [vmem:[%s1698_s1 + $0x50] sm:$0xff] (!%p112_p2) }
   0x9   : > { %v1402_v13 = vpack.c.bf16 (!%p112_p2), %v166_v8, %v163_v7  ;;  %v181_v24 = vand.u32 (!%p112_p2), 4294901760, %v1432_v21  ;;  %v184_v25 = vand.u32 (!%p112_p2), 4294901760, %v1437_v22  ;;  %v1460_v28 = vld [vmem:[%s1698_s1 + $0x58] sm:$0xff] (!%p112_p2)  ;;  %v1462_v29 = vsub.f32 (!%p112_p2), %v140_v0, %v157_v4  ;;  %v1477_v35 = vld [vmem:[%s1698_s1 + $0x60] sm:$0xff] (!%p112_p2)  ;;  %v1484_v36 = vld [vmem:[%s1698_s1 + $0x68] sm:$0xff] (!%p112_p2) }
   0xa   : > { %1174 = vmatpush3.bf16.msra.mxu1 (!%p112_p2), %v1398_v12  ;;  %1246 = vmatpush3.bf16.msra.mxu0 (!%p112_p2), %v1398_v12  ;;  %v1423_v18 = vpack.c.bf16 (!%p112_p2), %v172_v15, %v169_v14  ;;  %v1446_v23 = vpack.c.bf16 (!%p112_p2), %v178_v20, %v175_v19  ;;  %v1466_v31 = vsub.f32 (!%p112_p2), %v141_v1, %v160_v5  ;;  %v187_v33 = vand.u32 (!%p112_p2), 4294901760, %v1455_v27  ;;  %v1506_v43 = vld [vmem:[%s1698_s1 + $0x70] sm:$0xff] (!%p112_p2)  ;;  %v1511_v44 = vld [vmem:[%s1698_s1 + $0x78] sm:$0xff] (!%p112_p2) }
   0xb   : > { %1175 = vmatprep.subr.bf16.mxu1 (!%p112_p2), %v1344_v3  ;;  %1247 = vmatprep.subr.bf16.mxu0 (!%p112_p2), %v1344_v3  ;;  %v1470_v32 = vpack.c.bf16 (!%p112_p2), %v184_v25, %v181_v24  ;;  %v190_v34 = vand.u32 (!%p112_p2), 4294901760, %v1460_v28  ;;  %v1486_v37 = vsub.f32 (!%p112_p2), %v142_v2, %v163_v7  ;;  %v1488_v38 = vsub.f32 (!%p112_p2), %v143_v6, %v166_v8 }
   0xc   : > { %v193_v39 = vand.u32 (!%p112_p2), 4294901760, %v1477_v35  ;;  %v196_v42 = vand.u32 (!%p112_p2), 4294901760, %v1484_v36  ;;  %v250_v45 = vand.u32 (!%p112_p2), 4294901760, %v1462_v29  ;;  %v257_v46 = vand.u32 (!%p112_p2), 4294901760, %v1466_v31 }
   0xd   : > { %s1701_s10 = smov (!%p131_p3, %s851_s10), 1  ;;  %v1500_v41 = vpack.c.bf16 %v190_v34, %v187_v33  ;;  %v1518_v47 = vsub.f32 %v1387_v9, %v169_v14  ;;  %v1521_v48 = vsub.f32 %v1392_v10, %v172_v15  ;;  %v199_v49 = vand.u32 4294901760, %v1506_v43 }
   0xe   : > { %s856_s27 = sshll.u32 %s1701_s10, 3  ;;  %1177 = vmatpush3.bf16.msra.mxu1 %v1402_v13  ;;  %1249 = vmatpush3.bf16.msra.mxu0 %v1402_v13  ;;  %v202_v50 = vand.u32 4294901760, %v1511_v44  ;;  %v264_v52 = vand.u32 4294901760, %v1486_v37  ;;  %v1533_v53 = vpack.c.bf16 %v196_v42, %v193_v39  ;;  %v251_v54 = vsub.f32 %v1462_v29, %v250_v45 }
   0xf   : > { %1178 = vmatprep.subr.bf16.mxu1 %v1344_v3  ;;  %1250 = vmatprep.subr.bf16.mxu0 %v1344_v3  ;;  %s134_s6 = scalar_lea.vmem %s1697_s0, %s856_s27  ;;  %v258_v55 = vsub.f32 %v1466_v31, %v257_v46  ;;  %v271_v56 = vand.u32 4294901760, %v1488_v38  ;;  %v1541_v57 = vsub.f32 %v1413_v16, %v175_v19  ;;  %v1544_v58 = vsub.f32 %v1418_v17, %v178_v20  ;;  %s138_s23 = scalar_lea.vmem %s1699_s2, %s856_s27 }
  0x10   : > { %v139_v26 = vld [vmem:[%s134_s6] sm:$0xff]  ;;  %v265_v60 = vsub.f32 %v1486_v37, %v264_v52  ;;  %v278_v61 = vand.u32 4294901760, %v1518_v47  ;;  %v285_v62 = vand.u32 4294901760, %v1521_v48  ;;  %v1556_v63 = vpack.c.bf16 %v202_v50, %v199_v49 }
  0x11   : > { %v1464_v30 = vand.u32 4294901760, %v139_v26  ;;  %v252_v0 = vand.u32 4294901760, %v251_v54  ;;  %v259_v1 = vand.u32 4294901760, %v258_v55  ;;  %v272_v2 = vsub.f32 %v1488_v38, %v271_v56 }
  0x12   : > { %1180 = vmatpush3.bf16.msra.mxu1 %v1423_v18  ;;  %1252 = vmatpush3.bf16.msra.mxu0 %v1423_v18  ;;  %v1562_v4 = vsub.f32 %v1432_v21, %v181_v24  ;;  %v1565_v5 = vsub.f32 %v1437_v22, %v184_v25  ;;  %v1269_v6 = vpack.c.bf16 %v257_v46, %v250_v45  ;;  %v266_v8 = vand.u32 4294901760, %v265_v60 }
  0x13   : > { %1181 = vmatprep.subr.bf16.mxu1 %v1344_v3  ;;  %1253 = vmatprep.subr.bf16.mxu0 %v1344_v3  ;;  %v1492_v40 = vsub.f32 %v139_v26, %v1464_v30  ;;  %v279_v9 = vsub.f32 %v1518_v47, %v278_v61  ;;  %v286_v10 = vsub.f32 %v1521_v48, %v285_v62  ;;  %v273_v15 = vand.u32 4294901760, %v272_v2 }
  0x14   : > { %v1197_v14 = vpack.c.bf16 %v259_v1, %v252_v0  ;;  %v292_v16 = vand.u32 4294901760, %v1541_v57  ;;  %v299_v17 = vand.u32 4294901760, %v1544_v58  ;;  %v1578_v19 = vsub.f32 %v1455_v27, %v187_v33 }
  0x15   : > { %v239_v51 = vand.u32 4294901760, %v1492_v40  ;;  %v1583_v20 = vsub.f32 %v1460_v28, %v190_v34  ;;  %v1272_v21 = vpack.c.bf16 %v271_v56, %v264_v52  ;;  %v280_v22 = vand.u32 4294901760, %v279_v9 }
  0x16   : > { %1183 = vmatpush3.bf16.msra.mxu1 %v1446_v23  ;;  %1255 = vmatpush3.bf16.msra.mxu0 %v1446_v23  ;;  %v287_v24 = vand.u32 4294901760, %v286_v10  ;;  %v306_v25 = vand.u32 4294901760, %v1562_v4  ;;  %v1200_v26 = vpack.c.bf16 %v273_v15, %v266_v8  ;;  %v293_v45 = vsub.f32 %v1541_v57, %v292_v16 }
  0x17   : > { %1184 = vmatprep.subr.bf16.mxu1 %v1344_v3  ;;  %1256 = vmatprep.subr.bf16.mxu0 %v1344_v3  ;;  %v240_v59 = vsub.f32 %v1492_v40, %v239_v51  ;;  %v300_v27 = vsub.f32 %v1544_v58, %v299_v17  ;;  %v313_v33 = vand.u32 4294901760, %v1565_v5  ;;  %v1594_v28 = vsub.f32 %v1477_v35, %v193_v39 }
  0x18   : > { %v1599_v34 = vsub.f32 %v1484_v36, %v196_v42  ;;  %v1203_v46 = vpack.c.bf16 %v287_v24, %v280_v22  ;;  %v307_v52 = vsub.f32 %v1562_v4, %v306_v25  ;;  %v320_v54 = vand.u32 4294901760, %v1578_v19 }
  0x19   : > { %v241_v7 = vand.u32 4294901760, %v240_v59  ;;  %v294_v35 = vand.u32 4294901760, %v293_v45  ;;  %v301_v39 = vand.u32 4294901760, %v300_v27  ;;  %v314_v55 = vsub.f32 %v1565_v5, %v313_v33 }
  0x1a   : > { %1186 = vmatpush3.bf16.msra.mxu1 %v1470_v32  ;;  %1258 = vmatpush3.bf16.msra.mxu0 %v1470_v32  ;;  %v327_v36 = vand.u32 4294901760, %v1583_v20  ;;  %v1614_v42 = vsub.f32 %v1506_v43, %v199_v49  ;;  %v1619_v56 = vsub.f32 %v1511_v44, %v202_v50  ;;  %v1278_v59 = vpack.c.bf16 %v299_v17, %v292_v16 }
  0x1b   : > { %1187 = vmatprep.subr.bf16.mxu1 %v1344_v3  ;;  %1259 = vmatprep.subr.bf16.mxu0 %v1344_v3  ;;  %v308_v60 = vand.u32 4294901760, %v307_v52  ;;  %v1206_v0 = vpack.c.bf16 %v301_v39, %v294_v35  ;;  %v315_v1 = vand.u32 4294901760, %v314_v55  ;;  %v341_v43 = vand.u32 4294901760, %v1599_v34 }
  0x1c   : > { %v328_v2 = vsub.f32 %v1583_v20, %v327_v36  ;;  %v1281_v44 = vpack.c.bf16 %v313_v33, %v306_v25  ;;  %v355_v10 = vand.u32 4294901760, %v1619_v56 }
  0x1d   : > { %v342_v9 = vsub.f32 %v1599_v34, %v341_v43 }
  0x1e   : > { %1189 = vmatpush3.bf16.msra.mxu1 %v1500_v41  ;;  %1261 = vmatpush3.bf16.msra.mxu0 %v1500_v41  ;;  %v329_v8 = vand.u32 4294901760, %v328_v2  ;;  %v356_v22 = vsub.f32 %v1619_v56, %v355_v10 }
  0x1f   : > { %1190 = vmatprep.subr.bf16.mxu1 %v1344_v3  ;;  %1262 = vmatprep.subr.bf16.mxu0 %v1344_v3  ;;  %v343_v17 = vand.u32 4294901760, %v342_v9 }
  0x20   : > { %v357_v45 = vand.u32 4294901760, %v356_v22 }
  0x22   : > { %1192 = vmatpush3.bf16.msra.mxu1 %v1533_v53  ;;  %1264 = vmatpush3.bf16.msra.mxu0 %v1533_v53 }
  0x23   : > { %1193 = vmatprep.subr.bf16.mxu1 %v1344_v3  ;;  %1265 = vmatprep.subr.bf16.mxu0 %v1344_v3 }
  0x26   : > { %1195 = vmatpush3.bf16.msra.mxu1 %v1556_v63  ;;  %1267 = vmatpush3.bf16.msra.mxu0 %v1556_v63 }
  0x27   : > { %1196 = vmatprep.subr.bf16.mxu1 %v1344_v3  ;;  %1268 = vmatprep.subr.bf16.mxu0 %v1344_v3 }
  0x29   : > { %995 = vmatmul.mubr.f32.vlgmr.msra.gmra.mrb[0].mxu1 %v241_v7  ;;  %1100 = vmatmul.mubr.f32.vlgmr.msra.gmra.mrb[0].mxu0 %v239_v51  ;;  %v1275_v51 = vpack.c.bf16 %v285_v62, %v278_v61  ;;  %v321_v61 = vsub.f32 %v1578_v19, %v320_v54  ;;  %v334_v62 = vand.u32 4294901760, %v1594_v28  ;;  %v1209_v7 = vpack.c.bf16 %v315_v1, %v308_v60 }
  0x2a   : > { %1198 = vmatpush3.bf16.msra.mxu1 %v1197_v14  ;;  %1270 = vmatpush3.bf16.msra.mxu0 %v1269_v6  ;;  %v348_v6 = vand.u32 4294901760, %v1614_v42  ;;  %v1284_v14 = vpack.c.bf16 %v327_v36, %v320_v54 }
  0x2b   : > { %1199 = vmatprep.subr.bf16.mxu1 %v1344_v3  ;;  %1271 = vmatprep.subr.bf16.mxu0 %v1344_v3  ;;  %v322_v49 = vand.u32 4294901760, %v321_v61  ;;  %v335_v50 = vsub.f32 %v1594_v28, %v334_v62  ;;  %v1287_v25 = vpack.c.bf16 %v341_v43, %v334_v62 }
  0x2c   : > { %1029 = vmatprep.mubr.msk.f32.mxu1 %vm1345_vm0, %v1346_v11  ;;  %1134 = vmatprep.mubr.msk.f32.mxu0 %vm1345_vm0, %v1346_v11  ;;  %v1290_v33 = vpack.c.bf16 %v355_v10, %v348_v6 }
  0x2d   : > { %v336_v15 = vand.u32 4294901760, %v335_v50  ;;  %v1212_v16 = vpack.c.bf16 %v329_v8, %v322_v49 }
  0x2e   : > { %1201 = vmatpush3.bf16.msra.mxu1 %v1200_v26  ;;  %1273 = vmatpush3.bf16.msra.mxu0 %v1272_v21  ;;  %v349_v21 = vsub.f32 %v1614_v42, %v348_v6 }
  0x2f   : > { %1202 = vmatprep.subr.bf16.mxu1 %v1344_v3  ;;  %1274 = vmatprep.subr.bf16.mxu0 %v1344_v3  ;;  %v1215_v24 = vpack.c.bf16 %v343_v17, %v336_v15 }
  0x30   : > { %v350_v26 = vand.u32 4294901760, %v349_v21 }
  0x32   : > { %1204 = vmatpush3.bf16.msra.mxu1 %v1203_v46  ;;  %1276 = vmatpush3.bf16.msra.mxu0 %v1275_v51  ;;  %v1218_v27 = vpack.c.bf16 %v357_v45, %v350_v26  ;;  %v1221_v46 = vpack.c.bf16 %v1466_v31, %v1462_v29  ;;  %v1224_v51 = vpack.c.bf16 %v1488_v38, %v1486_v37 }
  0x33   : > { %1205 = vmatprep.subr.bf16.mxu1 %v1344_v3  ;;  %1277 = vmatprep.subr.bf16.mxu0 %v1344_v3  ;;  %v1227_v29 = vpack.c.bf16 %v1521_v48, %v1518_v47 }
  0x36   : > { %1207 = vmatpush3.bf16.msra.mxu1 %v1206_v0  ;;  %1279 = vmatpush3.bf16.msra.mxu0 %v1278_v59 }
  0x37   : > { %1208 = vmatprep.subr.bf16.mxu1 %v1344_v3  ;;  %1280 = vmatprep.subr.bf16.mxu0 %v1344_v3 }
  0x3a   : > { %1210 = vmatpush3.bf16.msra.mxu1 %v1209_v7  ;;  %1282 = vmatpush3.bf16.msra.mxu0 %v1281_v44 }
  0x3b   : > { %1211 = vmatprep.subr.bf16.mxu1 %v1344_v3  ;;  %1283 = vmatprep.subr.bf16.mxu0 %v1344_v3 }
  0x3e   : > { %1213 = vmatpush3.bf16.msra.mxu1 %v1212_v16  ;;  %1285 = vmatpush3.bf16.msra.mxu0 %v1284_v14 }
  0x3f   : > { %1214 = vmatprep.subr.bf16.mxu1 %v1344_v3  ;;  %1286 = vmatprep.subr.bf16.mxu0 %v1344_v3 }
  0x42   : > { %1216 = vmatpush3.bf16.msra.mxu1 %v1215_v24  ;;  %1288 = vmatpush3.bf16.msra.mxu0 %v1287_v25 }
  0x43   : > { %1217 = vmatprep.subr.bf16.mxu1 %v1344_v3  ;;  %1289 = vmatprep.subr.bf16.mxu0 %v1344_v3 }
  0x46   : > { %1219 = vmatpush3.bf16.msra.mxu1 %v1218_v27  ;;  %1291 = vmatpush3.bf16.msra.mxu0 %v1290_v33 }
  0x47   : > { %1220 = vmatprep.subr.bf16.mxu1 %v1344_v3  ;;  %1292 = vmatprep.subr.bf16.mxu0 %v1344_v3 }
  0x49   : > { %1030 = vmatmul.mubr.f32.vlgmr.msra.gmra.mrb[0].mxu1 %v1464_v30  ;;  %1135 = vmatmul.mubr.f32.vlgmr.msra.gmra.mrb[0].mxu0 %v1464_v30 }
  0x4a   : > { %1222 = vmatpush3.bf16.msra.mxu1 %v1221_v46  ;;  %1294 = vmatpush3.bf16.msra.mxu0 %v1398_v12  ;;  %v1230_v12 = vpack.c.bf16 %v1544_v58, %v1541_v57 }
  0x4b   : > { %1223 = vmatprep.subr.bf16.mxu1 %v1344_v3  ;;  %1295 = vmatprep.subr.bf16.mxu0 %v1344_v3 }
  0x4c   : > { %1064 = vmatprep.mubr.msk.f32.mxu1 %vm1345_vm0, %v1346_v11  ;;  %1169 = vmatprep.mubr.msk.f32.mxu0 %vm1345_vm0, %v1346_v11  ;;  %v1233_v11 = vpack.c.bf16 %v1565_v5, %v1562_v4 }
  0x4e   : > { %1225 = vmatpush3.bf16.msra.mxu1 %v1224_v51  ;;  %1297 = vmatpush3.bf16.msra.mxu0 %v1402_v13  ;;  %v1236_v13 = vpack.c.bf16 %v1583_v20, %v1578_v19 }
  0x4f   : > { %1226 = vmatprep.subr.bf16.mxu1 %v1344_v3  ;;  %1298 = vmatprep.subr.bf16.mxu0 %v1344_v3 }
  0x52   : > { %1228 = vmatpush3.bf16.msra.mxu1 %v1227_v29  ;;  %1300 = vmatpush3.bf16.msra.mxu0 %v1423_v18  ;;  %v1239_v18 = vpack.c.bf16 %v1599_v34, %v1594_v28 }
  0x53   : > { %1229 = vmatprep.subr.bf16.mxu1 %v1344_v3  ;;  %1301 = vmatprep.subr.bf16.mxu0 %v1344_v3 }
  0x56   : > { %1231 = vmatpush3.bf16.msra.mxu1 %v1230_v12  ;;  %1303 = vmatpush3.bf16.msra.mxu0 %v1446_v23  ;;  %v1242_v23 = vpack.c.bf16 %v1619_v56, %v1614_v42 }
  0x57   : > { %1232 = vmatprep.subr.bf16.mxu1 %v1344_v3  ;;  %1304 = vmatprep.subr.bf16.mxu0 %v1344_v3 }
  0x5a   : > { %1234 = vmatpush3.bf16.msra.mxu1 %v1233_v11  ;;  %1306 = vmatpush3.bf16.msra.mxu0 %v1470_v32 }
  0x5b   : > { %1235 = vmatprep.subr.bf16.mxu1 %v1344_v3  ;;  %1307 = vmatprep.subr.bf16.mxu0 %v1344_v3 }
  0x5e   : > { %1237 = vmatpush3.bf16.msra.mxu1 %v1236_v13  ;;  %1309 = vmatpush3.bf16.msra.mxu0 %v1500_v41 }
  0x5f   : > { %1238 = vmatprep.subr.bf16.mxu1 %v1344_v3  ;;  %1310 = vmatprep.subr.bf16.mxu0 %v1344_v3 }
  0x62   : > { %1240 = vmatpush3.bf16.msra.mxu1 %v1239_v18  ;;  %1312 = vmatpush3.bf16.msra.mxu0 %v1533_v53 }
  0x63   : > { %1241 = vmatprep.subr.bf16.mxu1 %v1344_v3  ;;  %1313 = vmatprep.subr.bf16.mxu0 %v1344_v3 }
  0x66   : > { %1243 = vmatpush3.bf16.msra.mxu1 %v1242_v23  ;;  %1315 = vmatpush3.bf16.msra.mxu0 %v1556_v63 }
  0x69   : > { %1065 = vmatmul.mubr.f32.vlgmr.msra.gmra.mrb[0].mxu1 %v1492_v40  ;;  %1170 = vmatmul.mubr.f32.vlgmr.msra.gmra.mrb[0].mxu0 %v1464_v30 }
 0x13c   : > { %v498_v31 = vpop.f32.mrb[0].mxu1  ;;  %v793_v32 = vpop.f32.mrb[0].mxu0 }
 0x13d   : > { %v1316_v37 = vadd.f32 %v793_v32, %v498_v31  ;;  %v1066_v38 = vpop.f32.mrb[1].mxu1  ;;  %v1171_v41 = vpop.f32.mrb[1].mxu0 }
 0x13f   : > { %797 = vst [vmem:[%s138_s23] sm:$0xff] %v1316_v37 }
 0x140 PF: > { %s12_s9 = sadd.s32 1, %s1342_s9  }
 0x141   : > { %p9_p4 = scmp.ge.s32.totalorder %s12_s9, 4  }
 0x143   :  { %11 = sbr.rel (!%p9_p4) target bundleno = 1 (0x1), region = 58 }

</bundles_post_ra>
